<compile_context>
chip_gen: v5e
topology: v5e:2x2
jax: 0.10.0
libtpu: 0.0.40
codegen_flags: <defaults>
</compile_context>

<pallas_src>
import functools

import jax
import jax.numpy as jnp
from jax import lax
from jax.experimental import pallas as pl
from jax.experimental.pallas import tpu as pltpu


def _round_up(a, b):
    return ((a + b - 1) // b) * b


# ---------------------------------------------------------------------------
# Kernel 1: token-tiled Linear  y = x @ W + b   (used for qkv and proj)
#   bf16 operands on the MXU, f32 accumulation, f32 bias add.
# ---------------------------------------------------------------------------
def _linear_kernel(x_ref, w_ref, b_ref, o_ref):
    # x_ref: (tm, Cin)   w_ref: (Cin, Cout) bf16   b_ref: (1, Cout) f32
    x = x_ref[...].astype(jnp.bfloat16)
    w = w_ref[...].astype(jnp.bfloat16)          # no-op: wrapper passes bf16 weights
    y = jnp.dot(x, w, preferred_element_type=jnp.float32)
    y = y + b_ref[...]                           # bias add in f32
    o_ref[...] = y.astype(o_ref.dtype)


def linear_pallas(x2d, w_bf16, b, *, tm=256, out_dtype=None):
    """x2d: [M, Cin], w_bf16: [Cin, Cout] (bf16), b: [Cout] (f32) -> [M, Cout].

    M is padded up to a multiple of the (adaptive) token tile; padded rows are
    sliced off afterwards.  Full W stays VMEM-resident (fine at these C).
    """
    M, Cin = x2d.shape
    Cout = w_bf16.shape[1]
    out_dtype = x2d.dtype if out_dtype is None else out_dtype

    tm_eff = min(tm, _round_up(M, 8))            # keep sublane-aligned tiles
    Mp = _round_up(M, tm_eff)
    if Mp != M:
        x2d = jnp.pad(x2d, ((0, Mp - M), (0, 0)))
    b2d = b.reshape(1, Cout).astype(jnp.float32)

    cost = pl.CostEstimate(
        flops=2 * Mp * Cin * Cout,
        transcendentals=0,
        bytes_accessed=(Mp * Cin * jnp.dtype(x2d.dtype).itemsize
                        + Cin * Cout * 2                    # bf16 weights
                        + Cout * 4
                        + Mp * Cout * jnp.dtype(out_dtype).itemsize),
    )

    out = pl.pallas_call(
        _linear_kernel,
        out_shape=jax.ShapeDtypeStruct((Mp, Cout), out_dtype),
        grid=(Mp // tm_eff,),
        in_specs=[
            pl.BlockSpec((tm_eff, Cin), lambda i: (i, 0)),   # x tile (tokens)
            pl.BlockSpec((Cin, Cout), lambda i: (0, 0)),     # W (resident, bf16)
            pl.BlockSpec((1, Cout), lambda i: (0, 0)),       # b (resident, f32)
        ],
        out_specs=pl.BlockSpec((tm_eff, Cout), lambda i: (i, 0)),
        compiler_params=pltpu.CompilerParams(
            dimension_semantics=("parallel",)),
        cost_estimate=cost,
    )(x2d, w_bf16, b2d)

    return out[:M] if Mp != M else out


# ---------------------------------------------------------------------------
# Kernel 2: channel attention, Gb (batch, head) groups per grid step.
#   attn   = scale * (k^T @ v)         (Gb, D, D), f32 accumulation
#   attn   = softmax(attn, axis=-1)    (lane-axis reduce, f32 math)
#   out^T  = attn @ q^T                (Gb, D, N), lane-dense store
# All matmul operands stay in their native (bf16) dtype; only the small
# D x D softmax math is f32.
# ---------------------------------------------------------------------------
def _chan_attn_kernel(q_ref, k_ref, v_ref, ot_ref, *, scale):
    q = q_ref[...]                                  # (Gb, N, D) bf16
    k = k_ref[...]                                  # (Gb, N, D) bf16
    v = v_ref[...]                                  # (Gb, N, D) bf16

    # attn[g, d, e] = scale * sum_n k[g, n, d] * v[g, n, e]
    attn = lax.dot_general(k, v, (((1,), (1,)), ((0,), (0,))),
                           preferred_element_type=jnp.float32) * scale
    # softmax over the last (lane) axis, in f32
    attn = attn - jnp.max(attn, axis=-1, keepdims=True)
    attn = jnp.exp(attn)
    attn = attn * pl.reciprocal(jnp.sum(attn, axis=-1, keepdims=True), approx=True)

    # out^T[g, d, n] = sum_e attn[g, d, e] * q[g, n, e]
    out_t = lax.dot_general(attn.astype(q.dtype), q, (((2,), (2,)), ((0,), (0,))),
                            preferred_element_type=jnp.float32)
    ot_ref[...] = out_t.astype(ot_ref.dtype)


def channel_attn_pallas(q, k, v, *, scale, gb=8):
    """q, k, v: [G, N, D] (G = B*num_heads) -> out^T: [G, D, N]."""
    G, N, D = q.shape
    gb = min(gb, G)
    Gp = _round_up(G, gb)
    if Gp != G:
        pad = ((0, Gp - G), (0, 0), (0, 0))
        q = jnp.pad(q, pad)
        k = jnp.pad(k, pad)
        v = jnp.pad(v, pad)

    kern = functools.partial(_chan_attn_kernel, scale=scale)
    out = pl.pallas_call(
        kern,
        out_shape=jax.ShapeDtypeStruct((Gp, D, N), q.dtype),
        grid=(Gp // gb,),
        in_specs=[
            pl.BlockSpec((gb, N, D), lambda g: (g, 0, 0)),
            pl.BlockSpec((gb, N, D), lambda g: (g, 0, 0)),
            pl.BlockSpec((gb, N, D), lambda g: (g, 0, 0)),
        ],
        out_specs=pl.BlockSpec((gb, D, N), lambda g: (g, 0, 0)),
        compiler_params=pltpu.CompilerParams(
            dimension_semantics=("parallel",)),
    )(q, k, v)
    return out[:G] if Gp != G else out


# ---------------------------------------------------------------------------
# Full module forward
# ---------------------------------------------------------------------------
def channel_attention_pallas(x, w_qkv, b_qkv, w_proj, b_proj, *, num_heads,
                             tm=256, gb=8):
    """x: [B, N, C]; w_qkv: [C, 3C]; b_qkv: [3C]; w_proj: [C, C]; b_proj: [C].

    Weights are stored [in, out] (transpose of torch.nn.Linear's [out, in]).
    """
    B, N, C = x.shape
    H = num_heads
    D = C // H
    scale = float(D) ** (-0.5)
    M = B * N

    # bf16 weights: native MXU rate, half the HBM/VMEM footprint.
    w_qkv_bf = w_qkv.astype(jnp.bfloat16)
    w_proj_bf = w_proj.astype(jnp.bfloat16)

    # qkv projection (Pallas, token-tiled); intermediate kept in bf16.
    x2d = x.reshape(M, C)
    qkv2d = linear_pallas(x2d, w_qkv_bf, b_qkv, tm=tm,
                          out_dtype=jnp.bfloat16)                 # [M, 3C] bf16

    # Head split (wrapper-side layout plumbing, mirrors the torch permute).
    # No extra v^T transpose: the kernel contracts over N directly.
    # TODO(synk): when D % 128 == 0 the split can be fused into the attention
    # kernel's index_maps (read column slabs of qkv2d directly).
    qkv = qkv2d.reshape(B, N, 3, H, D).transpose(2, 0, 3, 1, 4)   # [3, B, H, N, D]
    q = qkv[0].reshape(B * H, N, D)
    k = qkv[1].reshape(B * H, N, D)
    v = qkv[2].reshape(B * H, N, D)

    # Channel attention (Pallas, Gb groups per grid step, lane-dense out^T).
    out_t = channel_attn_pallas(q, k, v, scale=scale, gb=gb)      # [B*H, D, N]
    attn_out = (out_t.reshape(B, H, D, N)
                     .transpose(0, 3, 1, 2)                       # [B, N, H, D]
                     .reshape(M, C))

    # Output projection (Pallas, token-tiled); proj_drop p=0.0 -> identity.
    y2d = linear_pallas(attn_out, w_proj_bf, b_proj, tm=tm, out_dtype=x.dtype)
    return y2d.reshape(B, N, C)


# ---------------------------------------------------------------------------
# Pure-JAX reference (mirrors the PyTorch forward exactly, f32)
# ---------------------------------------------------------------------------
def channel_attention_reference(x, w_qkv, b_qkv, w_proj, b_proj, num_heads):
    B, N, C = x.shape
    H = num_heads
    D = C // H
    scale = float(D) ** (-0.5)

    qkv = jnp.dot(x, w_qkv) + b_qkv                                # [B, N, 3C]
    qkv = qkv.reshape(B, N, 3, H, D).transpose(2, 0, 3, 1, 4)      # [3, B, H, N, D]
    q, k, v = qkv[0], qkv[1], qkv[2]
    k = k * scale
    attn = jnp.einsum('bhnd,bhne->bhde', k, v)                     # k^T @ v
    attn = jax.nn.softmax(attn, axis=-1)
    out = jnp.einsum('bhij,bhnj->bhni', attn, q)                   # (attn @ q^T)^T
    out = out.transpose(0, 2, 1, 3).reshape(B, N, C)
    return jnp.dot(out, w_proj) + b_proj


if __name__ == "__main__":
    # Small shapes consistent with the module: batch=2, seq=8, dim=32, heads=8.
    B, N = 2, 8
    C = 32
    num_heads = 8

    key = jax.random.PRNGKey(0)
    kx, k1, k2, k3, k4 = jax.random.split(key, 5)

    x = jax.random.normal(kx, (B, N, C), dtype=jnp.float32)
    # Synthetic weights, stored [in, out] (transpose of torch's [out, in]).
    w_qkv = jax.random.normal(k1, (C, 3 * C), jnp.float32) * 0.05
    b_qkv = jax.random.normal(k2, (3 * C,), jnp.float32) * 0.01
    w_proj = jax.random.normal(k3, (C, C), jnp.float32) * 0.05
    b_proj = jax.random.normal(k4, (C,), jnp.float32) * 0.01

    out = channel_attention_pallas(x, w_qkv, b_qkv, w_proj, b_proj,
                                   num_heads=num_heads)
    out = jax.block_until_ready(out)

    ref = channel_attention_reference(x, w_qkv, b_qkv, w_proj, b_proj, num_heads)
    assert out.shape == (B, N, C)
    # bf16 MXU operands + approx reciprocal -> relaxed tolerance vs f32 reference.
    assert jnp.allclose(out, ref, atol=2e-2, rtol=2e-2), "mismatch vs reference"

    print("KERNEL_OK")
</pallas_src>

<mosaic_0001>
module attributes {stable_mosaic.version = 11 : i64} {
  func.func @_linear_kernel(%arg0: i32, %arg1: memref<16x32xf32, #tpu.memory_space<vmem>>, %arg2: memref<32x96xbf16, #tpu.memory_space<vmem>>, %arg3: memref<1x96xf32, #tpu.memory_space<vmem>>, %arg4: memref<16x96xbf16, #tpu.memory_space<vmem>>) attributes {dimension_semantics = [#tpu.dimension_semantics<parallel>], iteration_bounds = array<i64: 1>, scalar_prefetch = 0 : i64, scratch_operands = 0 : i64, tpu.core_type = #tpu.core_type<tc>, window_params = [{transform_indices = @transform_0, window_bounds = array<i64: 16, 32>}, {pipeline_mode = #tpu.pipeline_mode<synchronous>, transform_indices = @transform_1, window_bounds = array<i64: 32, 96>}, {pipeline_mode = #tpu.pipeline_mode<synchronous>, transform_indices = @transform_2, window_bounds = array<i64: 1, 96>}, {transform_indices = @transform_3, window_bounds = array<i64: 16, 96>}]} {
    %c0 = arith.constant 0 : index
    %c0_0 = arith.constant 0 : index
    %0 = vector.load %arg1[%c0, %c0_0] : memref<16x32xf32, #tpu.memory_space<vmem>>, vector<16x32xf32>
    %1 = arith.truncf %0 : vector<16x32xf32> to vector<16x32xbf16>
    %c0_1 = arith.constant 0 : index
    %c0_2 = arith.constant 0 : index
    %2 = vector.load %arg2[%c0_1, %c0_2] : memref<32x96xbf16, #tpu.memory_space<vmem>>, vector<32x96xbf16>
    %cst = arith.constant dense<0.000000e+00> : vector<16x96xf32>
    %3 = tpu.matmul %1, %2, %cst {dimension_numbers = #tpu.dot_dimension_numbers<[1], [0], [0], [1], [0, 0, 1, 1], [], []>} : vector<16x32xbf16>, vector<32x96xbf16>, vector<16x96xf32> -> vector<16x96xf32>
    %c0_3 = arith.constant 0 : index
    %c0_4 = arith.constant 0 : index
    %4 = vector.load %arg3[%c0_3, %c0_4] : memref<1x96xf32, #tpu.memory_space<vmem>>, vector<1x96xf32>
    %5 = vector.broadcast %4 : vector<1x96xf32> to vector<16x96xf32>
    %6 = arith.addf %3, %5 : vector<16x96xf32>
    %7 = arith.truncf %6 : vector<16x96xf32> to vector<16x96xbf16>
    %c0_5 = arith.constant 0 : index
    %c0_6 = arith.constant 0 : index
    %8 = vector.load %arg4[%c0_5, %c0_6] : memref<16x96xbf16, #tpu.memory_space<vmem>>, vector<16x96xbf16>
    tpu.vector_store %arg4[%c0_5, %c0_6], %7 {strides = array<i32>} : memref<16x96xbf16, #tpu.memory_space<vmem>>, vector<16x96xbf16>,
    return
  }
  func.func @transform_0(%arg0: i32) -> (i32, i32) {
    %c0_i32 = arith.constant 0 : i32
    %c0_i32_0 = arith.constant 0 : i32
    return %arg0, %c0_i32 : i32, i32
  }
  func.func @transform_1(%arg0: i32) -> (i32, i32) {
    %c0_i32 = arith.constant 0 : i32
    %c0_i32_0 = arith.constant 0 : i32
    %c0_i32_1 = arith.constant 0 : i32
    return %c0_i32, %c0_i32_0 : i32, i32
  }
  func.func @transform_2(%arg0: i32) -> (i32, i32) {
    %c0_i32 = arith.constant 0 : i32
    %c0_i32_0 = arith.constant 0 : i32
    %c0_i32_1 = arith.constant 0 : i32
    return %c0_i32, %c0_i32_0 : i32, i32
  }
  func.func @transform_3(%arg0: i32) -> (i32, i32) {
    %c0_i32 = arith.constant 0 : i32
    %c0_i32_0 = arith.constant 0 : i32
    return %arg0, %c0_i32 : i32, i32
  }
}

</mosaic_0001>

<bundles_post_ra>
// kernel: tpu_custom_call.1
= control target key start
LH: loop header
LB: loop body
LE: loop exit
PB: predicated region body
PF: predicated region fallthrough
CT: control target
= control target key end

     0   :  { %8 = vsyncpa [#allocation3], 0  ;;  %s256_s0 = inlined_call_operand.hbm [shape: f32[16,32], index: 0, kind: input, shape index: {}]   ;;  %s257_s1 = inlined_call_operand.hbm [shape: bf16[32,96], index: 1, kind: input, shape index: {}]   ;;  %s258_s2 = inlined_call_operand.vmem [shape: f32[1,96], index: 2, kind: input, shape index: {}]   ;;  %s259_s3 = inlined_call_operand.hbm [shape: bf16[16,96], index: 3, kind: output, shape index: {}]  }
   0x1   :  { %9 = vsyncpa [#allocation6], 0 }
   0x2   :  { %10 = vsyncpa [#allocation4], 0  ;;  %s15_s14 = sshll.u32 %s256_s0, 4  ;;  %s211_s15 = smov [#allocation2]   ;;  %s16_s14 = int_to_ptr.hbm [resolvable:$true] %s15_s14 }
   0x3   :  { %s17_s16 = sshll.u32 %s211_s15, 4  ;;  %s28_s19 = sshll.u32 %s257_s1, 4  ;;  %s18_s16 = int_to_ptr.vmem [resolvable:$true] %s17_s16  ;;  %s29_s19 = int_to_ptr.hbm [resolvable:$true] %s28_s19 }
   0x4   :  { %s212_s20 = smov 128   ;;  %s213_s21 = smov 8  }
   0x5   :  { %23 = dma.hbm_to_vmem [thread:$0]  %s16_s14, 256, %s18_s16, [#allocation3], %s212_s20, %s212_s20, %s213_s21  }
   0x6   :  { %s214_s22 = smov [#allocation5]   ;;  %s215_s24 = smov 64  }
   0x7   :  { %s30_s23 = sshll.u32 %s214_s22, 4  ;;  %s216_s25 = smov 4   ;;  %s31_s23 = int_to_ptr.vmem [resolvable:$true] %s30_s23 }
   0x8   :  { %36 = dma.hbm_to_vmem [thread:$0]  %s29_s19, 256, %s31_s23, [#allocation6], %s215_s24, %s215_s24, %s216_s25  }
   0x9   :  { %205 = dma.done.wait [#allocation3], 256  }
   0xa   :  { %206 = vsyncadd [#allocation3], 4294967040 }
   0xb   :  { %207 = dma.done.wait [#allocation6], 256  }
   0xc   :  { %208 = vsyncadd [#allocation6], 4294967040  ;;  %v124_v0 = vld [vmem:[#allocation5 + $0x8] sm:$0xff]  ;;  %v123_v1 = vld [vmem:[#allocation5] sm:$0xff]  ;;  %vm71_vm0 = vcmask 261120   ;;  %vm91_vm1 = vcmask 781312  }
   0xd   :  { %81 = vmatpush.bf16.msra.mxu0 %v124_v0  ;;  %v48_v2 = vld [vmem:[#allocation2] sm:$0xff]  ;;  %v49_v3 = vld [vmem:[#allocation2 + $0x8] sm:$0xff]  ;;  %s217_s26 = smov [#allocation7]   ;;  %s100_s30 = sshll.u32 %s259_s3, 4  ;;  %s101_s30 = int_to_ptr.hbm [resolvable:$true] %s100_s30 }
   0xe   :  { %v50_v4 = vpack.c.bf16 %v49_v3, %v48_v2  ;;  %v132_v5 = vld [vmem:[%s258_s2] ss:$0 sm:$0xff]  ;;  %s98_s27 = sshll.u32 %s217_s26, 4  ;;  %s99_s27 = int_to_ptr.vmem [resolvable:$true] %s98_s27 }
  0x11   :  { %82 = vmatpush.bf16.msra.mxu0 %v123_v1 }
  0x14   :  { %122 = vmatmul.msk.bf16.vlgmr.msra.gmra.mxu0 %vm71_vm0, %v50_v4 }
  0x91   :  { %v84_v6 = vpop.f32.mrf.mxu0 }
  0x92   :  { %v85_v7 = vadd.f32 %v132_v5, %v84_v6 }
  0x94   :  { %v89_v8 = vpack.c.bf16 %v85_v7, %v85_v7 }
  0x96   :  { %92 = vst.msk [vmem:[#allocation7] sm:$0xf] %vm91_vm1, %v89_v8 }
  0x99   :  { %v86_v9 = vpop.f32.mrf.mxu0 }
  0x9a   :  { %v87_v10 = vadd.f32 %v132_v5, %v86_v9 }
  0x9c   :  { %v90_v11 = vpack.c.bf16 %v87_v10, %v87_v10 }
  0x9e   :  { %93 = vst.msk [vmem:[#allocation7 + $0x4] sm:$0xf] %vm91_vm1, %v90_v11 }
  0x9f   :  { %106 = dma.vmem_to_hbm [thread:$0]  %s99_s27, 128, %s101_s30, [#allocation4], %s215_s24, %s215_s24, %s216_s25  }
  0xa0   :  { %209 = dma.done.wait [#allocation4], 128  }
  0xa1   :  { %210 = vsyncadd [#allocation4], 4294967168 }
  0xa2   :  { %111 = vsyncpa [#allocation3], 1 }
  0xa3   :  { %112 = vsyncpa [#allocation6], 1 }
  0xa4   :  { %113 = vsyncpa [#allocation4], 1 }

</bundles_post_ra>
